<compile_context>
chip_gen: v5e
topology: v5e:2x2
jax: 0.10.0
libtpu: 0.0.40
codegen_flags: <defaults>
</compile_context>

<pallas_src>
import jax
import jax.numpy as jnp
from jax import lax
from jax.experimental import pallas as pl
from jax.experimental.pallas import tpu as pltpu

# Logical (module) shapes — BERT hidden_size=768 scaled down to 32 for the demo.
B, S, H, C = 2, 8, 32, 2
VOCAB = 64
DR_RATE = 0.1            # dr_rate must be truthy (forward uses `out` only then)
SEED = 1234

# Padded, lane/sublane-dense kernel shapes (pure layout plumbing in the wrapper).
BP = 8                   # batch padded to one sublane group
HP = 128                 # hidden padded to one full lane width
CP = 128                 # num_classes padded to one full lane width

# Hoisted dropout constants.
_DROP_SCALE = 1.0 / (1.0 - DR_RATE)
_INV_2_23 = 1.0 / float(1 << 23)


# ---------------------------------------------------------------------------
# Fused kernel: attention mask + embedding add + masked-mean "pooler" stub +
#               dense/tanh + dropout + classifier Linear.
# ---------------------------------------------------------------------------
def _bert_head_kernel(seed_ref, valid_ref, tok_ref, seg_ref, pos_ref,
                      wp_ref, bp_ref, wc_ref, bc_ref, out_ref):
    # --- gen_attention_mask (fused; was a separate pallas_call) -------------
    # mask[i, j] = 1.0 if j < valid_length[i] else 0.0
    col = lax.broadcasted_iota(jnp.int32, (BP, S), 1)                 # (BP, S)
    mask = (col < valid_ref[...]).astype(jnp.float32)                 # (BP, S)

    # --- fused embedding sum: tok + seg + pos -------------------------------
    emb = tok_ref[...] + seg_ref[...] + pos_ref[...][None, :, :]      # (BP, S, HP)

    # --- masked mean pooling over the sequence (BERT-pooler input stub) -----
    # (At real S/H sizes express this as an MXU matmul; at S=8 the VPU path
    #  is free under the DMA/matmul critical path.)
    msum = jnp.maximum(jnp.sum(mask, axis=1, keepdims=True), 1.0)     # (BP, 1)
    pooled = jnp.sum(emb * mask[:, :, None], axis=1) / msum           # (BP, HP)

    # --- pooler dense + tanh (bf16 MXU operands, f32 accumulation) ----------
    pooler = jnp.tanh(
        jnp.dot(pooled.astype(jnp.bfloat16), wp_ref[...],
                preferred_element_type=jnp.float32)
        + bp_ref[...])                                                # (BP, HP)

    # --- dropout (inverted scaling), portable in-kernel hash PRNG -----------
    # One (8,128) vreg of int32 hash ops: free filler under the matmuls.
    seed = seed_ref[0]
    r = lax.broadcasted_iota(jnp.int32, (BP, HP), 0)
    c = lax.broadcasted_iota(jnp.int32, (BP, HP), 1)
    x = (r * jnp.int32(16777619)) ^ (c * jnp.int32(-1640531527)) ^ seed
    x = x ^ (x >> 13)
    x = x * jnp.int32(1540483477)
    x = x ^ (x >> 15)
    u = jnp.bitwise_and(x, jnp.int32(0x7FFFFF)).astype(jnp.float32) * _INV_2_23
    keep = (u >= DR_RATE).astype(jnp.float32)
    dropped = pooler * keep * _DROP_SCALE                             # (BP, HP)

    # --- classifier: nn.Linear(hidden_size, num_classes), lane-dense output -
    out_ref[...] = (
        jnp.dot(dropped.astype(jnp.bfloat16), wc_ref[...],
                preferred_element_type=jnp.float32)
        + bc_ref[...])                                                # (BP, CP)


# ---------------------------------------------------------------------------
# Wrapper: embedding gathers (plain-JAX glue), lane-dense padding, one launch.
# ---------------------------------------------------------------------------
def _pad_to(x, shape):
    pads = [(0, t - s) for s, t in zip(x.shape, shape)]
    return jnp.pad(x, pads)


def bert_classifier_forward(token_ids, valid_length, segment_ids, params,
                            dropout_seed=SEED):
    # Embedding lookups (gathers) stay in plain JAX; everything else is fused
    # into the single Pallas kernel below.
    tok_g = params["tok_emb"][token_ids].astype(jnp.float32)          # (B, S, H)
    seg_g = params["seg_emb"][segment_ids].astype(jnp.float32)        # (B, S, H)
    pos = params["pos_emb"].astype(jnp.float32)                       # (S, H)

    # Pad to lane/sublane-dense kernel shapes (zeros do not change the math).
    tok_p = _pad_to(tok_g, (BP, S, HP))
    seg_p = _pad_to(seg_g, (BP, S, HP))
    pos_p = _pad_to(pos, (S, HP))

    wp = _pad_to(params["w_pool"], (HP, HP)).astype(jnp.bfloat16)
    bp = _pad_to(params["b_pool"], (1, HP)).astype(jnp.float32)
    wc = _pad_to(params["w_cls"], (HP, CP)).astype(jnp.bfloat16)
    bc = _pad_to(params["b_cls"], (1, CP)).astype(jnp.float32)

    valid = _pad_to(valid_length.astype(jnp.int32).reshape(B, 1), (BP, 1))
    seed_arr = jnp.array([dropout_seed], dtype=jnp.int32)

    vmem = pl.BlockSpec(memory_space=pltpu.MemorySpace.VMEM)
    smem = pl.BlockSpec(memory_space=pltpu.MemorySpace.SMEM)

    logits_pad = pl.pallas_call(
        _bert_head_kernel,
        out_shape=jax.ShapeDtypeStruct((BP, CP), jnp.float32),
        in_specs=[smem,          # seed (scalar)
                  vmem,          # valid_length (BP, 1) int32
                  vmem, vmem,    # tok / seg gathered embeddings (BP, S, HP)
                  vmem,          # positional embeddings (S, HP)
                  vmem, vmem,    # pooler weight (bf16) / bias (f32)
                  vmem, vmem],   # classifier weight (bf16) / bias (f32)
        out_specs=vmem,
    )(seed_arr, valid, tok_p, seg_p, pos_p, wp, bp, wc, bc)

    # Slice the lane-dense (BP, CP) slab back to the logical (B, C) logits.
    return logits_pad[:B, :C]


def init_params(key):
    ks = jax.random.split(key, 6)
    scale = 0.02
    return {
        "tok_emb": scale * jax.random.normal(ks[0], (VOCAB, H), jnp.float32),
        "seg_emb": scale * jax.random.normal(ks[1], (2, H), jnp.float32),
        "pos_emb": scale * jax.random.normal(ks[2], (S, H), jnp.float32),
        "w_pool": scale * jax.random.normal(ks[3], (H, H), jnp.float32),
        "b_pool": jnp.zeros((1, H), jnp.float32),
        "w_cls": scale * jax.random.normal(ks[4], (H, C), jnp.float32),
        "b_cls": jnp.zeros((1, C), jnp.float32),
    }


if __name__ == "__main__":
    key = jax.random.PRNGKey(0)
    kp, kt, ksg = jax.random.split(key, 3)

    params = init_params(kp)
    token_ids = jax.random.randint(kt, (B, S), 0, VOCAB, dtype=jnp.int32)
    segment_ids = jax.random.randint(ksg, (B, S), 0, 2, dtype=jnp.int32)
    valid_length = jnp.array([5, 8], dtype=jnp.int32)

    logits = bert_classifier_forward(token_ids, valid_length, segment_ids, params)
    logits = jax.block_until_ready(logits)
    assert logits.shape == (B, C) and logits.dtype == jnp.float32
    assert bool(jnp.all(jnp.isfinite(logits)))
    print("KERNEL_OK")
</pallas_src>

<mosaic_0001>
module attributes {stable_mosaic.version = 11 : i64} {
  func.func @_bert_head_kernel(%arg0: memref<1xi32, #tpu.memory_space<smem>>, %arg1: memref<8x1xi32, #tpu.memory_space<vmem>>, %arg2: memref<8x8x128xf32, #tpu.memory_space<vmem>>, %arg3: memref<8x8x128xf32, #tpu.memory_space<vmem>>, %arg4: memref<8x128xf32, #tpu.memory_space<vmem>>, %arg5: memref<128x128xbf16, #tpu.memory_space<vmem>>, %arg6: memref<1x128xf32, #tpu.memory_space<vmem>>, %arg7: memref<128x128xbf16, #tpu.memory_space<vmem>>, %arg8: memref<1x128xf32, #tpu.memory_space<vmem>>, %arg9: memref<8x128xf32, #tpu.memory_space<vmem>>) attributes {dimension_semantics = [], scalar_prefetch = 0 : i64, scratch_operands = 0 : i64, tpu.core_type = #tpu.core_type<tc>} {
    %0 = tpu.iota {dimensions = array<i32: 1>} : vector<8x8xi32>
    %c0 = arith.constant 0 : index
    %c0_0 = arith.constant 0 : index
    %1 = vector.load %arg1[%c0, %c0_0] : memref<8x1xi32, #tpu.memory_space<vmem>>, vector<8x1xi32>
    %2 = vector.broadcast %1 : vector<8x1xi32> to vector<8x8xi32>
    %3 = arith.cmpi slt, %0, %2 : vector<8x8xi32>
    %4 = arith.extui %3 : vector<8x8xi1> to vector<8x8xi32>
    %5 = arith.sitofp %4 : vector<8x8xi32> to vector<8x8xf32>
    %c0_1 = arith.constant 0 : index
    %c0_2 = arith.constant 0 : index
    %c0_3 = arith.constant 0 : index
    %6 = vector.load %arg2[%c0_1, %c0_2, %c0_3] : memref<8x8x128xf32, #tpu.memory_space<vmem>>, vector<8x8x128xf32>
    %c0_4 = arith.constant 0 : index
    %c0_5 = arith.constant 0 : index
    %c0_6 = arith.constant 0 : index
    %7 = vector.load %arg3[%c0_4, %c0_5, %c0_6] : memref<8x8x128xf32, #tpu.memory_space<vmem>>, vector<8x8x128xf32>
    %8 = arith.addf %6, %7 : vector<8x8x128xf32>
    %c0_7 = arith.constant 0 : index
    %c0_8 = arith.constant 0 : index
    %9 = vector.load %arg4[%c0_7, %c0_8] : memref<8x128xf32, #tpu.memory_space<vmem>>, vector<8x128xf32>
    %10 = vector.shape_cast %9 : vector<8x128xf32> to vector<1x8x128xf32>
    %11 = vector.broadcast %10 : vector<1x8x128xf32> to vector<8x8x128xf32>
    %12 = arith.addf %8, %11 : vector<8x8x128xf32>
    %cst = arith.constant dense<0.000000e+00> : vector<8xf32>
    %13 = vector.multi_reduction <add>, %5, %cst [1] : vector<8x8xf32> to vector<8xf32>
    %14 = vector.shape_cast %13 : vector<8xf32> to vector<8x1xf32>
    %cst_9 = arith.constant 1.000000e+00 : f32
    %15 = vector.broadcast %cst_9 : f32 to vector<8x1xf32>
    %16 = arith.maximumf %14, %15 : vector<8x1xf32>
    %17 = vector.shape_cast %5 : vector<8x8xf32> to vector<8x8x1xf32>
    %18 = vector.broadcast %17 : vector<8x8x1xf32> to vector<8x8x128xf32>
    %19 = arith.mulf %12, %18 : vector<8x8x128xf32>
    %cst_10 = arith.constant dense<0.000000e+00> : vector<8x128xf32>
    %20 = vector.multi_reduction <add>, %19, %cst_10 [1] : vector<8x8x128xf32> to vector<8x128xf32>
    %21 = vector.broadcast %16 : vector<8x1xf32> to vector<8x128xf32>
    %22 = arith.divf %20, %21 : vector<8x128xf32>
    %23 = arith.truncf %22 : vector<8x128xf32> to vector<8x128xbf16>
    %c0_11 = arith.constant 0 : index
    %c0_12 = arith.constant 0 : index
    %24 = vector.load %arg5[%c0_11, %c0_12] : memref<128x128xbf16, #tpu.memory_space<vmem>>, vector<128x128xbf16>
    %cst_13 = arith.constant dense<0.000000e+00> : vector<8x128xf32>
    %25 = tpu.matmul %23, %24, %cst_13 {dimension_numbers = #tpu.dot_dimension_numbers<[1], [0], [0], [1], [0, 0, 1, 1], [], []>} : vector<8x128xbf16>, vector<128x128xbf16>, vector<8x128xf32> -> vector<8x128xf32>
    %c0_14 = arith.constant 0 : index
    %c0_15 = arith.constant 0 : index
    %26 = vector.load %arg6[%c0_14, %c0_15] : memref<1x128xf32, #tpu.memory_space<vmem>>, vector<1x128xf32>
    %27 = vector.broadcast %26 : vector<1x128xf32> to vector<8x128xf32>
    %28 = arith.addf %25, %27 : vector<8x128xf32>
    %29 = math.tanh %28 : vector<8x128xf32>
    %c0_16 = arith.constant 0 : index
    %30 = memref.load %arg0[%c0_16] : memref<1xi32, #tpu.memory_space<smem>>
    %31 = tpu.iota {dimensions = array<i32: 0>} : vector<8x128xi32>
    %32 = tpu.iota {dimensions = array<i32: 1>} : vector<8x128xi32>
    %c16777619_i32 = arith.constant 16777619 : i32
    %33 = vector.broadcast %c16777619_i32 : i32 to vector<8x128xi32>
    %34 = arith.muli %31, %33 : vector<8x128xi32>
    %c-1640531527_i32 = arith.constant -1640531527 : i32
    %35 = vector.broadcast %c-1640531527_i32 : i32 to vector<8x128xi32>
    %36 = arith.muli %32, %35 : vector<8x128xi32>
    %37 = arith.xori %34, %36 : vector<8x128xi32>
    %38 = vector.broadcast %30 : i32 to vector<8x128xi32>
    %39 = arith.xori %37, %38 : vector<8x128xi32>
    %c13_i32 = arith.constant 13 : i32
    %40 = vector.broadcast %c13_i32 : i32 to vector<8x128xi32>
    %41 = arith.shrsi %39, %40 : vector<8x128xi32>
    %42 = arith.xori %39, %41 : vector<8x128xi32>
    %c1540483477_i32 = arith.constant 1540483477 : i32
    %43 = vector.broadcast %c1540483477_i32 : i32 to vector<8x128xi32>
    %44 = arith.muli %42, %43 : vector<8x128xi32>
    %c15_i32 = arith.constant 15 : i32
    %45 = vector.broadcast %c15_i32 : i32 to vector<8x128xi32>
    %46 = arith.shrsi %44, %45 : vector<8x128xi32>
    %47 = arith.xori %44, %46 : vector<8x128xi32>
    %c8388607_i32 = arith.constant 8388607 : i32
    %48 = vector.broadcast %c8388607_i32 : i32 to vector<8x128xi32>
    %49 = arith.andi %47, %48 : vector<8x128xi32>
    %50 = arith.sitofp %49 : vector<8x128xi32> to vector<8x128xf32>
    %cst_17 = arith.constant 1.1920929E-7 : f32
    %51 = vector.broadcast %cst_17 : f32 to vector<8x128xf32>
    %52 = arith.mulf %50, %51 : vector<8x128xf32>
    %cst_18 = arith.constant 1.000000e-01 : f32
    %53 = vector.broadcast %cst_18 : f32 to vector<8x128xf32>
    %54 = arith.cmpf oge, %52, %53 : vector<8x128xf32>
    %55 = arith.extui %54 : vector<8x128xi1> to vector<8x128xi32>
    %56 = arith.sitofp %55 : vector<8x128xi32> to vector<8x128xf32>
    %57 = arith.mulf %29, %56 : vector<8x128xf32>
    %cst_19 = arith.constant 1.11111116 : f32
    %58 = vector.broadcast %cst_19 : f32 to vector<8x128xf32>
    %59 = arith.mulf %57, %58 : vector<8x128xf32>
    %60 = arith.truncf %59 : vector<8x128xf32> to vector<8x128xbf16>
    %c0_20 = arith.constant 0 : index
    %c0_21 = arith.constant 0 : index
    %61 = vector.load %arg7[%c0_20, %c0_21] : memref<128x128xbf16, #tpu.memory_space<vmem>>, vector<128x128xbf16>
    %cst_22 = arith.constant dense<0.000000e+00> : vector<8x128xf32>
    %62 = tpu.matmul %60, %61, %cst_22 {dimension_numbers = #tpu.dot_dimension_numbers<[1], [0], [0], [1], [0, 0, 1, 1], [], []>} : vector<8x128xbf16>, vector<128x128xbf16>, vector<8x128xf32> -> vector<8x128xf32>
    %c0_23 = arith.constant 0 : index
    %c0_24 = arith.constant 0 : index
    %63 = vector.load %arg8[%c0_23, %c0_24] : memref<1x128xf32, #tpu.memory_space<vmem>>, vector<1x128xf32>
    %64 = vector.broadcast %63 : vector<1x128xf32> to vector<8x128xf32>
    %65 = arith.addf %62, %64 : vector<8x128xf32>
    %c0_25 = arith.constant 0 : index
    %c0_26 = arith.constant 0 : index
    %66 = vector.load %arg9[%c0_25, %c0_26] : memref<8x128xf32, #tpu.memory_space<vmem>>, vector<8x128xf32>
    tpu.vector_store %arg9[%c0_25, %c0_26], %65 {strides = array<i32>} : memref<8x128xf32, #tpu.memory_space<vmem>>, vector<8x128xf32>,
    return
  }
}

</mosaic_0001>

<bundles_post_ra>
// kernel: tpu_custom_call.1
= control target key start
LH: loop header
LB: loop body
LE: loop exit
PB: predicated region body
PF: predicated region fallthrough
CT: control target
= control target key end

     0   :  { %15 = vsyncpa [#allocation4], 0  ;;  %s1197_s0 = inlined_call_operand.<no memory space> [shape: s32[1], index: 0, kind: input, shape index: {}]   ;;  %s1198_s1 = inlined_call_operand.vmem [shape: s32[8,1], index: 1, kind: input, shape index: {}]   ;;  %s1199_s2 = inlined_call_operand.hbm [shape: f32[8,8,128], index: 2, kind: input, shape index: {}]   ;;  %s1200_s3 = inlined_call_operand.hbm [shape: f32[8,8,128], index: 3, kind: input, shape index: {}]   ;;  %s1201_s4 = inlined_call_operand.vmem [shape: f32[8,128], index: 4, kind: input, shape index: {}]   ;;  %s1202_s5 = inlined_call_operand.hbm [shape: bf16[128,128], index: 5, kind: input, shape index: {}]   ;;  %s1203_s6 = inlined_call_operand.vmem [shape: f32[1,128], index: 6, kind: input, shape index: {}]   ;;  %s1204_s7 = inlined_call_operand.hbm [shape: bf16[128,128], index: 7, kind: input, shape index: {}]   ;;  %s1205_s8 = inlined_call_operand.vmem [shape: f32[1,128], index: 8, kind: input, shape index: {}]   ;;  %s1206_s9 = inlined_call_operand.hbm [shape: f32[8,128], index: 9, kind: output, shape index: {}]  }
   0x1   :  { %16 = vsyncpa [#allocation7], 0 }
   0x2   :  { %17 = vsyncpa [#allocation10], 0 }
   0x3   :  { %18 = vsyncpa [#allocation5], 0  ;;  %s40_s11 = sshll.u32 %s1200_s3, 4  ;;  %s909_s12 = smov [#allocation6]   ;;  %s41_s11 = int_to_ptr.hbm [resolvable:$true] %s40_s11 }
   0x4   :  { %s42_s13 = sshll.u32 %s909_s12, 4  ;;  %s27_s16 = sshll.u32 %s1199_s2, 4  ;;  %s43_s13 = int_to_ptr.vmem [resolvable:$true] %s42_s13  ;;  %s28_s16 = int_to_ptr.hbm [resolvable:$true] %s27_s16 }
   0x5   :  { %s910_s17 = smov 128   ;;  %s911_s18 = smov 8  }
   0x6   :  { %48 = dma.hbm_to_vmem [thread:$0]  %s41_s11, 1024, %s43_s13, [#allocation7], %s910_s17, %s910_s17, %s911_s18  }
   0x7   :  { %s912_s19 = smov [#allocation3]   ;;  %s55_s23 = sshll.u32 %s1202_s5, 4  ;;  %s56_s23 = int_to_ptr.hbm [resolvable:$true] %s55_s23 }
   0x8   :  { %s29_s20 = sshll.u32 %s912_s19, 4  ;;  %s913_s3 = smov [#allocation8]   ;;  %s30_s20 = int_to_ptr.vmem [resolvable:$true] %s29_s20 }
   0x9   :  { %35 = dma.hbm_to_vmem [thread:$0]  %s28_s16, 1024, %s30_s20, [#allocation4], %s910_s17, %s910_s17, %s911_s18  }
   0xa   :  { %s57_s24 = sshll.u32 %s913_s3, 4  ;;  %s70_s2 = sshll.u32 %s1204_s7, 4  ;;  %s58_s24 = int_to_ptr.vmem [resolvable:$true] %s57_s24  ;;  %s71_s2 = int_to_ptr.hbm [resolvable:$true] %s70_s2 }
   0xb   :  { %s914_s27 = smov 64   ;;  %s915_s28 = smov 4  }
   0xc   :  { %63 = dma.hbm_to_vmem [thread:$0]  %s56_s23, 1024, %s58_s24, [#allocation7], %s914_s27, %s914_s27, %s915_s28  }
   0xd   :  { %s916_s29 = smov [#allocation9]  }
   0xe   :  { %s72_s30 = sshll.u32 %s916_s29, 4  ;;  %s73_s30 = int_to_ptr.vmem [resolvable:$true] %s72_s30 }
   0xf   :  { %78 = dma.hbm_to_vmem [thread:$0]  %s71_s2, 1024, %s73_s30, [#allocation10], %s914_s27, %s914_s27, %s915_s28  }
  0x10   :  { %901 = dma.done.wait [#allocation4], 1024  }
  0x11   :  { %902 = vsyncadd [#allocation4], 4294966272 }
  0x12   :  { %903 = dma.done.wait [#allocation7], 2048  }
  0x13   :  { %904 = vsyncadd [#allocation7], 4294965248 }
  0x14   :  { %905 = dma.done.wait [#allocation10], 1024  }
  0x15   :  { %906 = vsyncadd [#allocation10], 4294966272  ;;  %v97_v0 = vlaneseq  ;;  %v917_v1 = vmov 0   ;;  %v99_v3 = vld [vmem:[%s1198_s1] sm:$0xff]  ;;  %vm139_vm0 = vcmask 64512   ;;  %v918_v6 = vmov 0.0  }
  0x16   :  { %737 = vset.pattern.permute.xlu0 %v917_v1  ;;  %v111_v21 = vld [vmem:[#allocation3 + $0x28] sm:$0xff]  ;;  %v110_v23 = vld [vmem:[#allocation3 + $0x20] sm:$0xff]  ;;  %v112_v29 = vld [vmem:[#allocation3 + $0x30] sm:$0xff]  ;;  %s919_s15 = smov [#allocation11]   ;;  %s632_s18 = sshll.u32 %s1206_s9, 4  ;;  %s633_s18 = int_to_ptr.hbm [resolvable:$true] %s632_s18 }
  0x17   :  { %v982_v2 = vshrl.u32 %v97_v0, 7  ;;  %101 = vperm.xlu0 %737, %v99_v3   ;;  %v990_v4 = vand.u32 127, %v97_v0  ;;  %v119_v22 = vld [vmem:[#allocation6 + $0x28] sm:$0xff]  ;;  %v118_v24 = vld [vmem:[#allocation6 + $0x20] sm:$0xff]  ;;  %v113_v32 = vld [vmem:[#allocation3 + $0x38] sm:$0xff]  ;;  %s630_s16 = sshll.u32 %s919_s15, 4  ;;  %s631_s16 = int_to_ptr.vmem [resolvable:$true] %s630_s16 }
  0x18   :  { %v127_v25 = vadd.f32 %v119_v22, %v111_v21  ;;  %v126_v27 = vadd.f32 %v118_v24, %v110_v23  ;;  %v997_v28 = vld [vmem:[%s1201_s4] sm:$0xff]  ;;  %v120_v33 = vld [vmem:[#allocation6 + $0x30] sm:$0xff]  ;;  %v121_v34 = vld [vmem:[#allocation6 + $0x38] sm:$0xff] }
  0x19   :  { %749 = vset.pattern.permute.xlu2 %v982_v2  ;;  %738 = vset.pattern.permute.xlu1 %v982_v2  ;;  %v128_v37 = vadd.f32 %v120_v33, %v112_v29  ;;  %v129_v38 = vadd.f32 %v121_v34, %v113_v32  ;;  %v717_v47 = vld [vmem:[#allocation8 + $0x38] sm:$0xff]  ;;  %v107_v52 = vld [vmem:[#allocation3 + $0x8] sm:$0xff]  ;;  %v716_v54 = vld [vmem:[#allocation8 + $0x30] sm:$0xff] }
  0x1a   :  { %v136_v30 = vadd.f32 %v997_v28, %v127_v25  ;;  %v135_v35 = vadd.f32 %v997_v28, %v126_v27  ;;  %507 = vmatpush.bf16.msra.mxu0 %v717_v47  ;;  %v115_v53 = vld [vmem:[#allocation6 + $0x8] sm:$0xff]  ;;  %v108_v56 = vld [vmem:[#allocation3 + $0x10] sm:$0xff]  ;;  %v106_v63 = vld [vmem:[#allocation3] sm:$0xff] }
  0x1b   :  { %v137_v42 = vadd.f32 %v997_v28, %v128_v37  ;;  %v138_v43 = vadd.f32 %v997_v28, %v129_v38  ;;  %v116_v57 = vld [vmem:[#allocation6 + $0x10] sm:$0xff]  ;;  %v123_v60 = vadd.f32 %v115_v53, %v107_v52  ;;  %v715_v0 = vld [vmem:[#allocation8 + $0x28] sm:$0xff]  ;;  %v109_v3 = vld [vmem:[#allocation3 + $0x18] sm:$0xff] }
  0x1c   :  { %v124_v62 = vadd.f32 %v116_v57, %v108_v56  ;;  %v713_v24 = vld [vmem:[#allocation8 + $0x18] sm:$0xff] }
  0x1e   :  { %508 = vmatpush.bf16.msra.mxu0 %v716_v54 }
  0x1f   :  { %760 = vset.pattern.permute.xlu0 %v982_v2 }
  0x22   :  { %509 = vmatpush.bf16.msra.mxu0 %v715_v0 }
  0x89   :  { %v102_v5 = vpop.permute.xlu0 %101 }
  0x8a   :  { %vm103_vm1 = vcmp.lt.s32.totalorder %v990_v4, %v102_v5  ;;  %v114_v5 = vld [vmem:[#allocation6] sm:$0xff] }
  0x8b   :  { %v644_v7 = vsel %vm103_vm1, 1.0, %v918_v6 }
  0x8c   :  { %v140_v8 = vsel %vm139_vm0, %v644_v7, 0.0  ;;  %v172_v9 = vperm.slane %v644_v7, 4  ;;  %v179_v10 = vperm.slane %v644_v7, 5  ;;  %v151_v11 = vperm.slane %v644_v7, 1 }
  0x8d   :  { %141 = vadd.xlane.f32.xlu0 %v140_v8  ;;  %v158_v12 = vperm.slane %v644_v7, 2  ;;  %v186_v15 = vperm.slane %v644_v7, 6  ;;  %v193_v16 = vperm.slane %v644_v7, 7  ;;  %v144_v17 = vperm.slane %v644_v7, 0 }
  0x8e   :  { %v750_v13 = vpack.i.bf16 %v179_v10, %v172_v9  ;;  %v165_v18 = vperm.slane %v644_v7, 3  ;;  %v117_v7 = vld [vmem:[#allocation6 + $0x18] sm:$0xff] }
  0x8f   :  { %v739_v14 = vpack.i.bf16 %v158_v12, %v151_v11  ;;  %v755_v19 = vpack.i.bf16 %v193_v16, %v186_v15  ;;  %v132_v12 = vadd.f32 %v997_v28, %v123_v60  ;;  %v122_v15 = vadd.f32 %v114_v5, %v106_v63 }
  0x90   :  { %751 = vperm.xlu2 %749, %v750_v13   ;;  %v744_v20 = vpack.i.bf16 %v165_v18, %v144_v17  ;;  %v125_v16 = vadd.f32 %v117_v7, %v109_v3  ;;  %v714_v17 = vld [vmem:[#allocation8 + $0x20] sm:$0xff] }
  0x91   :  { %740 = vperm.xlu1 %738, %v739_v14   ;;  %v133_v14 = vadd.f32 %v997_v28, %v124_v62  ;;  %510 = vmatpush.bf16.msra.mxu0 %v714_v17 }
  0x95   :  { %511 = vmatpush.bf16.msra.mxu0 %v713_v24 }
  0x98   :  { %756 = vperm.xlu2 %749, %v755_v19  }
  0x99   :  { %745 = vperm.xlu1 %738, %v744_v20  }
  0xea   :  { %v752_v26 = vpop.permute.xlu2 %751 }
  0xeb   :  { %v754_v31 = vunpack.i.h.bf16 %v752_v26  ;;  %v753_v36 = vunpack.i.l.bf16 %v752_v26 }
  0xed   :  { %v205_v39 = vmul.f32 %v754_v31, %v136_v30  ;;  %v204_v41 = vmul.f32 %v753_v36, %v135_v35  ;;  %v131_v31 = vadd.f32 %v997_v28, %v122_v15  ;;  %v134_v35 = vadd.f32 %v997_v28, %v125_v16  ;;  %v710_v16 = vld [vmem:[#allocation8] sm:$0xff] }
  0xef   :  { %v238_v46 = vrot.slane %v205_v39, 4  ;;  %v232_v48 = vrot.slane %v204_v41, 4 }
  0xf1   :  { %v239_v51 = vadd.f32 %v238_v46, %v205_v39  ;;  %v233_v55 = vadd.f32 %v232_v48, %v204_v41 }
  0xf2   :  { %v757_v40 = vpop.permute.xlu2 %756 }
  0xf3   :  { %v759_v44 = vunpack.i.h.bf16 %v757_v40  ;;  %v758_v45 = vunpack.i.l.bf16 %v757_v40  ;;  %v240_v61 = vrot.slane %v239_v51, 2  ;;  %v234_v1 = vrot.slane %v233_v55, 2  ;;  %v712_v40 = vld [vmem:[#allocation8 + $0x10] sm:$0xff] }
  0xf4   :  { %512 = vmatpush.bf16.msra.mxu0 %v712_v40 }
  0xf5   :  { %v207_v49 = vmul.f32 %v759_v44, %v138_v43  ;;  %v206_v50 = vmul.f32 %v758_v45, %v137_v42  ;;  %v1006_v13 = vadd.f32 %v240_v61, %v239_v51  ;;  %v1009_v18 = vadd.f32 %v234_v1, %v233_v55 }
  0xf7   :  { %v250_v58 = vrot.slane %v207_v49, 4  ;;  %v244_v59 = vrot.slane %v206_v50, 4  ;;  %v242_v32 = vrot.slane %v1006_v13, 1  ;;  %v236_v33 = vrot.slane %v1009_v18, 1 }
  0xf9   :  { %v251_v9 = vadd.f32 %v250_v58, %v207_v49  ;;  %v245_v10 = vadd.f32 %v244_v59, %v206_v50  ;;  %v711_v58 = vld [vmem:[#allocation8 + $0x8] sm:$0xff] }
  0xfa   :  { %513 = vmatpush.bf16.msra.mxu0 %v711_v58 }
  0xfb   :  { %v252_v25 = vrot.slane %v251_v9, 2  ;;  %v246_v26 = vrot.slane %v245_v10, 2 }
  0xfd   :  { %v1032_v42 = vadd.f32 %v252_v25, %v251_v9  ;;  %v1034_v43 = vadd.f32 %v246_v26, %v245_v10 }
  0xfe   :  { %514 = vmatpush.bf16.msra.mxu0 %v710_v16  ;;  %v237_v16 = vadd.f32 %v236_v33, %v1009_v18 }
 0x100   :  { %v142_v8 = vpop.xlane.xlu0 %141 }
 0x101   :  { %v1003_v11 = vmax.f32 %v142_v8, 1.0 }
 0x103   :  { %v741_v19 = vpop.permute.xlu1 %740  ;;  %v1012_v20 = vrot.slane %v1003_v11, 1  ;;  %v1015_v21 = vrot.slane %v1003_v11, 2  ;;  %763 = vrcp.f32 %v1003_v11  ;;  %v1020_v27 = vrot.slane %v1003_v11, 3 }
 0x104   :  { %v743_v22 = vunpack.i.h.bf16 %v741_v19  ;;  %v742_v23 = vunpack.i.l.bf16 %v741_v19  ;;  %v281_v47 = vand.u32 2147483647, %v1003_v11  ;;  %v283_v51 = vand.u32 2147483648, %v1003_v11 }
 0x105   :  { %765 = vrcp.f32 %v1012_v20  ;;  %v298_v34 = vand.u32 2147483648, %v1012_v20  ;;  %v296_v38 = vand.u32 2147483647, %v1012_v20  ;;  %v313_v39 = vand.u32 2147483648, %v1015_v21 }
 0x106   :  { %v202_v29 = vmul.f32 %v743_v22, %v133_v14  ;;  %v201_v30 = vmul.f32 %v742_v23, %v132_v12  ;;  %767 = vrcp.f32 %v1015_v21  ;;  %v311_v44 = vand.u32 2147483647, %v1015_v21 }
 0x107   :  { %769 = vrcp.f32 %v1020_v27  ;;  %vm292_vm2 = vweird.f32 %v1012_v20  ;;  %v299_v49 = vor.u32 1.1754944e-38, %v298_v34  ;;  %vm307_vm3 = vweird.f32 %v1015_v21 }
 0x108   :  { %v220_v36 = vrot.slane %v202_v29, 4  ;;  %v214_v37 = vrot.slane %v201_v30, 4  ;;  %vm1045_vm4 = vcmp.eq.f32.partialorder %v296_v38, 8.507059e+37  ;;  %v314_v57 = vor.u32 1.1754944e-38, %v313_v39 }
 0x109   :  { %v1030_v41 = vpop.eup %763  ;;  %vm1050_vm6 = vcmp.eq.f32.partialorder %v311_v44, 8.507059e+37  ;;  %vm277_vm7 = vweird.f32 %v1003_v11  ;;  %vm322_vm9 = vweird.f32 %v1020_v27  ;;  %v326_v25 = vand.u32 2147483647, %v1020_v27 }
 0x10a   :  { %v221_v45 = vadd.f32 %v220_v36, %v202_v29  ;;  %v215_v28 = vadd.f32 %v214_v37, %v201_v30  ;;  %v273_v46 = vmul.f32 %v1030_v41, %v1003_v11  ;;  %vm278_vm10 = vweird.f32 %v1030_v41 }
 0x10b   :  { %v766_v48 = vpop.eup %765  ;;  %v746_v50 = vpop.permute.xlu1 %745  ;;  %v1064_v26 = vrot.slane %v1003_v11, 4  ;;  %vm1083_vm14 = vmor %vm277_vm7, %vm278_vm10  ;;  %v1093_v56 = vrot.slane %v1003_v11, 5  ;;  %vm282_vm0 = vcmp.eq.f32.partialorder %v281_v47, 8.507059e+37  ;;  %vm327_vm1 = vcmp.eq.f32.partialorder %v326_v25, 8.507059e+37 }
 0x10c   :  { %v768_v52 = vpop.eup %767  ;;  %v222_v53 = vrot.slane %v221_v45, 2  ;;  %v216_v54 = vrot.slane %v215_v28, 2  ;;  %v288_v55 = vmul.f32 %v766_v48, %v1012_v20  ;;  %vm293_vm5 = vweird.f32 %v766_v48 }
 0x10d   :  { %v303_v59 = vmul.f32 %v768_v52, %v1015_v21  ;;  %v748_v61 = vunpack.i.h.bf16 %v746_v50  ;;  %v747_v62 = vunpack.i.l.bf16 %v746_v50  ;;  %v274_v3 = vsub.f32 1.0, %v273_v46  ;;  %v1055_v5 = vpop.eup %769  ;;  %vm294_vm11 = vmor %vm292_vm2, %vm293_vm5 }
 0x10e   :  { %v223_v63 = vadd.f32 %v222_v53, %v221_v45  ;;  %v217_v0 = vadd.f32 %v216_v54, %v215_v28  ;;  %v289_v1 = vsub.f32 1.0, %v288_v55  ;;  %vm308_vm8 = vweird.f32 %v768_v52 }
 0x10f   :  { %v304_v7 = vsub.f32 1.0, %v303_v59  ;;  %v203_v8 = vmul.f32 %v748_v61, %v134_v35  ;;  %v200_v9 = vmul.f32 %v747_v62, %v131_v31  ;;  %v275_v15 = vmul.f32 %v1030_v41, %v274_v3  ;;  %vm309_vm12 = vmor %vm307_vm3, %vm308_vm8 }
 0x110   :  { %v224_v10 = vrot.slane %v223_v63, 1  ;;  %v218_v12 = vrot.slane %v217_v0, 1  ;;  %v290_v14 = vmul.f32 %v766_v48, %v289_v1  ;;  %v318_v23 = vmul.f32 %v1055_v5, %v1020_v27 }
 0x111   :  { %v305_v17 = vmul.f32 %v768_v52, %v304_v7  ;;  %v226_v19 = vrot.slane %v203_v8, 4  ;;  %v208_v22 = vrot.slane %v200_v9, 4  ;;  %v276_v38 = vadd.f32 %v1030_v41, %v275_v15 }
 0x112   :  { %v291_v24 = vadd.f32 %v766_v48, %v290_v14  ;;  %v319_v34 = vsub.f32 1.0, %v318_v23  ;;  %v225_v35 = vadd.f32 %v224_v10, %v223_v63  ;;  %v219_v36 = vadd.f32 %v218_v12, %v217_v0  ;;  %v725_v14 = vld [vmem:[#allocation9 + $0x38] sm:$0xff] }
 0x113   :  { %v306_v29 = vadd.f32 %v768_v52, %v305_v17  ;;  %v227_v30 = vadd.f32 %v226_v19, %v203_v8  ;;  %v209_v31 = vadd.f32 %v208_v22, %v200_v9  ;;  %vm323_vm13 = vweird.f32 %v1055_v5  ;;  %611 = vmatpush.bf16.msra.mxu1 %v725_v14 }
 0x114   :  { %v295_v37 = vsel %vm294_vm11, %v766_v48, %v291_v24  ;;  %v320_v46 = vmul.f32 %v1055_v5, %v319_v34  ;;  %v280_v54 = vsel %vm1083_vm14, %v1030_v41, %v276_v38  ;;  %vm1097_vm15 = vmor %vm322_vm9, %vm323_vm13  ;;  %771 = vrcp.f32 %v1064_v26  ;;  %v724_v24 = vld [vmem:[#allocation9 + $0x30] sm:$0xff] }
 0x115   :  { %v300_v39 = vsel %vm1045_vm4, %v299_v49, %v295_v37  ;;  %v310_v40 = vsel %vm309_vm12, %v768_v52, %v306_v29  ;;  %v228_v20 = vrot.slane %v227_v30, 2  ;;  %v210_v44 = vrot.slane %v209_v31, 2 }
 0x116   :  { %v301_v45 = vmul.f32 %v300_v39, %v219_v36  ;;  %v315_v28 = vsel %vm1050_vm6, %v314_v57, %v310_v40  ;;  %v328_v52 = vand.u32 2147483648, %v1020_v27  ;;  %v321_v55 = vadd.f32 %v1055_v5, %v320_v46  ;;  %v723_v39 = vld [vmem:[#allocation9 + $0x28] sm:$0xff] }
 0x117   :  { %v316_v48 = vmul.f32 %v315_v28, %v225_v35  ;;  %v229_v21 = vadd.f32 %v228_v20, %v227_v30  ;;  %v211_v50 = vadd.f32 %v210_v44, %v209_v31  ;;  %v248_v61 = vrot.slane %v1034_v43, 1  ;;  %612 = vmatpush.bf16.msra.mxu1 %v724_v24  ;;  %v721_v20 = vld [vmem:[#allocation9 + $0x18] sm:$0xff] }
 0x118   :  { %v393_v53 = vpack.c.bf16 %v301_v45, %v301_v45  ;;  %v284_v41 = vor.u32 1.1754944e-38, %v283_v51  ;;  %v325_v62 = vsel %vm1097_vm15, %v1055_v5, %v321_v55  ;;  %v1109_v63 = vrot.slane %v1003_v11, 6  ;;  %v722_v55 = vld [vmem:[#allocation9 + $0x20] sm:$0xff] }
 0x119   :  { %v394_v57 = vpack.c.bf16 %v316_v48, %v316_v48  ;;  %v230_v58 = vrot.slane %v229_v21, 1  ;;  %v212_v59 = vrot.slane %v211_v50, 1  ;;  %v329_v1 = vor.u32 1.1754944e-38, %v328_v52 }
 0x11a   :  { %v429_v3 = vunpack.c.l.b16 %v393_v53  ;;  %v285_v7 = vsel %vm282_vm0, %v284_v41, %v280_v54  ;;  %773 = vrcp.f32 %v1093_v56  ;;  %v341_v5 = vand.u32 2147483647, %v1064_v26  ;;  %v772_v47 = vpop.eup %771 }
 0x11b   :  { %v231_v0 = vadd.f32 %v230_v58, %v229_v21  ;;  %v213_v27 = vadd.f32 %v212_v59, %v211_v50  ;;  %v1114_v8 = vunpack.c.l.b16 %v394_v57  ;;  %v330_v9 = vsel %vm327_vm1, %v329_v1, %v325_v62  ;;  %613 = vmatpush.bf16.msra.mxu1 %v723_v39 }
 0x11c   :  { %v1118_v12 = vrot.slane %v1003_v11, 7  ;;  %775 = vrcp.f32 %v1109_v63  ;;  %v1124_v15 = vadd.f32 %v242_v32, %v1006_v13  ;;  %v254_v17 = vrot.slane %v1032_v42, 1 }
 0x11d   :  { %v286_v51 = vmul.f32 %v285_v7, %v213_v27  ;;  %v331_v10 = vmul.f32 %v330_v9, %v231_v0  ;;  %v343_v19 = vand.u32 2147483648, %v1064_v26  ;;  %v1132_v11 = vadd.f32 %v248_v61, %v1034_v43 }
 0x11e   :  { %v333_v23 = vmul.f32 %v772_v47, %v1064_v26  ;;  %vm337_vm2 = vweird.f32 %v1064_v26  ;;  %v436_v13 = vrot.slane %v429_v3, 7  ;;  %v439_v32 = vrot.slane %v1114_v8, 6 }
 0x11f   :  { %v392_v22 = vpack.c.bf16 %v286_v51, %v286_v51  ;;  %vm1137_vm3 = vcmp.eq.f32.partialorder %v341_v5, 8.507059e+37  ;;  %v356_v18 = vand.u32 2147483647, %v1093_v56  ;;  %v395_v29 = vpack.c.bf16 %v331_v10, %v331_v10  ;;  %614 = vmatpush.bf16.msra.mxu1 %v722_v55 }
 0x120   :  { %v774_v33 = vpop.eup %773  ;;  %v334_v43 = vsub.f32 1.0, %v333_v23  ;;  %v358_v30 = vand.u32 2147483648, %v1093_v56  ;;  %777 = vrcp.f32 %v1118_v12  ;;  %v344_v31 = vor.u32 1.1754944e-38, %v343_v19 }
 0x121   :  { %v348_v34 = vmul.f32 %v774_v33, %v1093_v56  ;;  %vm352_vm4 = vweird.f32 %v1093_v56  ;;  %v371_v35 = vand.u32 2147483647, %v1109_v63  ;;  %v428_v37 = vunpack.c.l.b16 %v392_v22 }
 0x122   :  { %v776_v36 = vpop.eup %775  ;;  %v335_v38 = vmul.f32 %v772_v47, %v334_v43  ;;  %vm338_vm5 = vweird.f32 %v772_v47  ;;  %vm367_vm6 = vweird.f32 %v1109_v63  ;;  %vm1148_vm7 = vcmp.eq.f32.partialorder %v356_v18, 8.507059e+37 }
 0x123   :  { %v349_v40 = vsub.f32 1.0, %v348_v34  ;;  %v363_v44 = vmul.f32 %v776_v36, %v1109_v63  ;;  %vm437_vm8 = vcmask 1041409   ;;  %v431_v45 = vunpack.c.l.b16 %v395_v29  ;;  %vm339_vm9 = vmor %vm337_vm2, %vm338_vm5  ;;  %615 = vmatpush.bf16.msra.mxu1 %v721_v20 }
 0x124   :  { %v336_v28 = vadd.f32 %v772_v47, %v335_v38  ;;  %v359_v46 = vor.u32 1.1754944e-38, %v358_v30  ;;  %v373_v48 = vand.u32 2147483648, %v1109_v63  ;;  %vm353_vm10 = vweird.f32 %v774_v33 }
 0x125   :  { %v350_v21 = vmul.f32 %v774_v33, %v349_v40  ;;  %v364_v50 = vsub.f32 1.0, %v363_v44  ;;  %vm1156_vm11 = vcmp.eq.f32.partialorder %v371_v35, 8.507059e+37  ;;  %vm368_vm12 = vweird.f32 %v776_v36  ;;  %vm354_vm14 = vmor %vm352_vm4, %vm353_vm10 }
 0x126   :  { %v778_v52 = vpop.eup %777  ;;  %v340_v53 = vsel %vm339_vm9, %v772_v47, %v336_v28  ;;  %v438_v54 = vsel %vm437_vm8, %v436_v13, %v428_v37  ;;  %vm440_vm13 = vcmask 1042434   ;;  %v442_v60 = vrot.slane %v431_v45, 5  ;;  %vm369_vm15 = vmor %vm367_vm6, %vm368_vm12  ;;  %v720_v45 = vld [vmem:[#allocation9 + $0x10] sm:$0xff] }
 0x127   :  { %v345_v57 = vsel %vm1137_vm3, %v344_v31, %v340_v53  ;;  %v351_v58 = vadd.f32 %v774_v33, %v350_v21  ;;  %v365_v26 = vmul.f32 %v776_v36, %v364_v50  ;;  %v378_v59 = vmul.f32 %v778_v52, %v1118_v12  ;;  %616 = vmatpush.bf16.msra.mxu1 %v720_v45  ;;  %v718_v21 = vld [vmem:[#allocation9] sm:$0xff] }
 0x128   :  { %v346_v61 = vmul.f32 %v345_v57, %v237_v16  ;;  %v374_v41 = vor.u32 1.1754944e-38, %v373_v48  ;;  %v386_v62 = vand.u32 2147483647, %v1118_v12  ;;  %v388_v3 = vand.u32 2147483648, %v1118_v12 }
 0x129   :  { %v355_v0 = vsel %vm354_vm14, %v774_v33, %v351_v58  ;;  %v366_v27 = vadd.f32 %v776_v36, %v365_v26  ;;  %v379_v1 = vsub.f32 1.0, %v378_v59  ;;  %v441_v51 = vsel %vm440_vm13, %v439_v32, %v438_v54 }
 0x12a   :  { %v360_v7 = vsel %vm1148_vm7, %v359_v46, %v355_v0  ;;  %v396_v8 = vpack.c.bf16 %v346_v61, %v346_v61  ;;  %vm443_vm0 = vcmask 1043459   ;;  %vm383_vm1 = vweird.f32 %v778_v52  ;;  %v719_v46 = vld [vmem:[#allocation9 + $0x8] sm:$0xff] }
 0x12b   :  { %v361_v56 = vmul.f32 %v360_v7, %v1124_v15  ;;  %v370_v9 = vsel %vm369_vm15, %v776_v36, %v366_v27  ;;  %v380_v5 = vmul.f32 %v778_v52, %v379_v1  ;;  %vm382_vm2 = vweird.f32 %v1118_v12  ;;  %617 = vmatpush.bf16.msra.mxu1 %v719_v46 }
 0x12c   :  { %v375_v10 = vsel %vm1156_vm11, %v374_v41, %v370_v9  ;;  %v432_v14 = vunpack.c.l.b16 %v396_v8  ;;  %vm446_vm3 = vcmask 1044484   ;;  %v444_v19 = vsel %vm443_vm0, %v442_v60, %v441_v51  ;;  %vm384_vm4 = vmor %vm382_vm2, %vm383_vm1  ;;  %v762_v41 = vld [vmem:[%s1205_s8] ss:$0 sm:$0xff] }
 0x12d   :  { %v376_v63 = vmul.f32 %v375_v10, %v1132_v11  ;;  %v381_v47 = vadd.f32 %v778_v52, %v380_v5  ;;  %v397_v16 = vpack.c.bf16 %v361_v56, %v361_v56  ;;  %v255_v22 = vadd.f32 %v254_v17, %v1032_v42 }
 0x12e   :  { %v389_v15 = vor.u32 1.1754944e-38, %v388_v3  ;;  %v445_v23 = vrot.slane %v432_v14, 4  ;;  %vm387_vm5 = vcmp.eq.f32.partialorder %v386_v62, 8.507059e+37  ;;  %vm449_vm6 = vcmask 1045509  }
 0x12f   :  { %v385_v24 = vsel %vm384_vm4, %v778_v52, %v381_v47  ;;  %v398_v13 = vpack.c.bf16 %v376_v63, %v376_v63  ;;  %v433_v32 = vunpack.c.l.b16 %v397_v16  ;;  %vm452_vm7 = vcmask 1046534   ;;  %618 = vmatpush.bf16.msra.mxu1 %v718_v21  ;;  %v761_v52 = vld [vmem:[%s1203_s6] ss:$0 sm:$0xff] }
 0x130   :  { %v390_v25 = vsel %vm387_vm5, %v389_v15, %v385_v24  ;;  %v447_v12 = vsel %vm446_vm3, %v445_v23, %v444_v19  ;;  %vm455_vm8 = vcmask 1047559   ;;  %v524_v36 = vmul.u32 16777619, %v982_v2 }
 0x131   :  { %v391_v18 = vmul.f32 %v390_v25, %v255_v22  ;;  %v434_v33 = vunpack.c.l.b16 %v398_v13  ;;  %v448_v11 = vrot.slane %v433_v32, 3  ;;  %v525_v37 = vmul.u32 2654435769, %v990_v4 }
 0x132   :  { %v527_v39 = vstv %s1197_s0 }
 0x133   :  { %v399_v29 = vpack.c.bf16 %v391_v18, %v391_v18  ;;  %v450_v43 = vsel %vm449_vm6, %v448_v11, %v447_v12  ;;  %v451_v30 = vrot.slane %v434_v33, 2  ;;  %v526_v38 = vxor.u32 %v525_v37, %v524_v36 }
 0x135   :  { %v435_v31 = vunpack.c.l.b16 %v399_v29  ;;  %v453_v34 = vsel %vm452_vm7, %v451_v30, %v450_v43  ;;  %v528_v40 = vxor.u32 %v527_v39, %v526_v38 }
 0x137   :  { %v454_v42 = vrot.slane %v435_v31, 1  ;;  %v529_v44 = vshra.s32 %v528_v40, 13 }
 0x139   :  { %v456_v17 = vsel %vm455_vm8, %v454_v42, %v453_v34  ;;  %v530_v28 = vxor.u32 %v529_v44, %v528_v40 }
 0x13a   :  { %v457_v35 = vpack.c.b16 %v456_v17, %v456_v17 }
 0x13b   :  { %v531_v48 = vmul.u32 1540483477, %v530_v28 }
 0x13c   :  { %515 = vmatmul.bf16.vlgmr.msra.gmra.mxu0 %v457_v35 }
 0x13d   :  { %v532_v50 = vshra.s32 %v531_v48, 15 }
 0x13f   :  { %v533_v2 = vxor.u32 %v532_v50, %v531_v48 }
 0x141   :  { %v534_v4 = vand.u32 8388607, %v533_v2 }
 0x143   :  { %v535_v49 = vcvt.s32.f32 %v534_v4 }
 0x145   :  { %v536_v54 = vmul.f32 1.1920929e-07, %v535_v49 }
 0x147   :  { %vm537_vm9 = vcmp.ge.f32.partialorder %v536_v54, 0.1 }
 0x148   :  { %v677_v57 = vsel %vm537_vm9, 1.0, %v918_v6 }
 0x1b9   :  { %v516_v53 = vpop.f32.mrf.mxu0 }
 0x1ba   :  { %v517_v55 = vadd.f32 %v761_v52, %v516_v53 }
 0x1bc   :  { %779 = vtanh.f32 %v517_v55 }
 0x1c1   :  { %v518_v58 = vpop.f32.mrf.mxu0 }
 0x1c2   :  { %v780_v26 = vpop.eup %779 }
 0x1c3   :  { %v540_v59 = vmul.f32 %v780_v26, %v677_v57 }
 0x1c5   :  { %v541_v60 = vmul.f32 1.1111112, %v540_v59 }
 0x1c7   :  { %v542_v61 = vpack.c.bf16 %v541_v60, %v541_v60 }
 0x1c9   :  { %619 = vmatmul.bf16.vlgmr.msra.gmra.mxu1 %v542_v61 }
 0x246   :  { %v620_v62 = vpop.f32.mrf.mxu1 }
 0x247   :  { %v621_v0 = vadd.f32 %v762_v41, %v620_v62 }
 0x249   :  { %624 = vst [vmem:[#allocation11] sm:$0xff] %v621_v0 }
 0x24a   :  { %635 = dma.vmem_to_hbm [thread:$0]  %s631_s16, 128, %s633_s18, [#allocation5]  }
 0x24e   :  { %v622_v6 = vpop.f32.mrf.mxu1 }
 0x24f   :  { %907 = dma.done.wait [#allocation5], 128  }
 0x250   :  { %908 = vsyncadd [#allocation5], 4294967168 }
 0x251   :  { %640 = vsyncpa [#allocation4], 1 }
 0x252   :  { %641 = vsyncpa [#allocation7], 1 }
 0x253   :  { %642 = vsyncpa [#allocation10], 1 }
 0x254   :  { %643 = vsyncpa [#allocation5], 1 }

</bundles_post_ra>
